<compile_context>
chip_gen: v6e
topology: v6e:2x2x1
jax: 0.10.0
libtpu: 0.0.40
codegen_flags: <defaults>
</compile_context>

<pallas_src>
import jax
import jax.numpy as jnp
from jax.experimental import pallas as pl
from jax.experimental.pallas import tpu as pltpu

# ----------------------------- problem sizes --------------------------------
N = 2            # batch
C = 4            # channels
H = W = 16       # spatial
HW = H * W       # 256 -> lane dimension (2 full lane groups)
HID = 32         # hidden width of the pointwise denoiser
AUG = 7          # augment-label dimension
COND = 1 + AUG   # [c_noise, augment_labels]
SC_STRIDE = 3 + COND   # per-sample scalars: [c_skip, c_out, c_in, cond(8)]


# ------------------------------ Pallas kernel -------------------------------
def _denoiser_kernel(sc_ref, x_ref, wcond_ref, w1t_ref, w2t_ref, b2_ref, o_ref):
    """Single invocation, whole batch.

    sc_ref    : (N*SC_STRIDE,)   SMEM  per-sample scalars
    x_ref     : (N, C, HW)       VMEM  augmented images, lane-dense over HW
    wcond_ref : (HID, 2+COND)    VMEM  packed [b_map | Wmap^T | b1] columns
    w1t_ref   : (HID, C)         VMEM  conv1 weight, contraction-ready
    w2t_ref   : (C, HID)         VMEM  conv2 weight, contraction-ready
    b2_ref    : (C, 1)           VMEM  conv2 bias column
    o_ref     : (N, C, HW)       VMEM  denoised output
    """
    # Shared weights: hoist out of the per-sample loop.
    w1t = w1t_ref[...]                         # (HID, C)
    w2t = w2t_ref[...]                         # (C, HID)
    b2 = b2_ref[...]                           # (C, 1)
    b_map = wcond_ref[:, 0:1]                  # (HID, 1)
    b1 = wcond_ref[:, 1 + COND:2 + COND]       # (HID, 1)

    for n in range(N):                         # N=2, static unroll
        base = n * SC_STRIDE
        c_skip = sc_ref[base + 0]
        c_out = sc_ref[base + 1]
        c_in = sc_ref[base + 2]

        # Conditioning MLP: emb = relu(Wmap^T [c_noise, aug] + b_map) as (HID, 1),
        # built as COND scalar-vector FMAs on the VPU (tiny; no MXU warm-up).
        emb = b_map
        for j in range(COND):
            emb = emb + wcond_ref[:, 1 + j:2 + j] * sc_ref[base + 3 + j]
        emb = jnp.maximum(emb, 0.0)

        x = x_ref[n]                           # (C, HW)
        xs = x * c_in                          # EDM input scale

        # conv1 (1x1) on the MXU: (HID, C) @ (C, HW) -> (HID, HW)
        h = jnp.dot(w1t, xs, preferred_element_type=jnp.float32)
        h = jnp.maximum(h + (b1 + emb), 0.0)   # single lane-broadcast add

        # conv2 (1x1) on the MXU: (C, HID) @ (HID, HW) -> (C, HW)
        f = jnp.dot(w2t, h, preferred_element_type=jnp.float32) + b2

        # EDM skip preconditioning: D = c_skip * x + c_out * F(c_in * x, ...)
        o_ref[n] = c_skip * x + c_out * f


def denoiser_pallas(scalars, x_flat, wcond, w1t, w2t, b2c):
    """scalars: (N*SC_STRIDE,) f32; x_flat: (N, C, HW) f32; packed weights."""
    return pl.pallas_call(
        _denoiser_kernel,
        out_shape=jax.ShapeDtypeStruct((N, C, HW), jnp.float32),
        in_specs=[
            pl.BlockSpec(memory_space=pltpu.MemorySpace.SMEM),   # scalars
            pl.BlockSpec(memory_space=pltpu.MemorySpace.VMEM),   # x
            pl.BlockSpec(memory_space=pltpu.MemorySpace.VMEM),   # wcond
            pl.BlockSpec(memory_space=pltpu.MemorySpace.VMEM),   # w1^T
            pl.BlockSpec(memory_space=pltpu.MemorySpace.VMEM),   # w2^T
            pl.BlockSpec(memory_space=pltpu.MemorySpace.VMEM),   # b2
        ],
        out_specs=pl.BlockSpec(memory_space=pltpu.MemorySpace.VMEM),
    )(scalars, x_flat, wcond, w1t, w2t, b2c)


# --------------------------- augment pipe (glue) -----------------------------
def augment_pipe(x_nchw, key):
    """Per-sample horizontal flip + brightness scale; returns (x_aug, labels)."""
    # TODO(synk): augmentation RNG / random flip have no Pallas equivalent; kept as JAX glue.
    kf, ks = jax.random.split(key)
    flip = jax.random.bernoulli(kf, 0.5, (N,))
    scale = 1.0 + 0.2 * jax.random.normal(ks, (N,), dtype=jnp.float32)
    x_flip = jnp.where(flip[:, None, None, None], x_nchw[:, :, :, ::-1], x_nchw)
    x_aug = x_flip * scale[:, None, None, None]
    labels = jnp.concatenate(
        [(flip.astype(jnp.float32) * 2.0 - 1.0)[:, None],
         (scale - 1.0)[:, None],
         jnp.zeros((N, AUG - 2), jnp.float32)],
        axis=1)                                                   # (N, AUG)
    return x_aug, labels


# --------------------------- weight packing (glue) ---------------------------
def pack_params(params):
    w_map, b_map, w1, b1, w2, b2 = params
    wcond = jnp.concatenate([b_map.T, w_map.T, b1.T], axis=1)     # (HID, 2+COND)
    w1t = w1.T                                                    # (HID, C)
    w2t = w2.T                                                    # (C, HID)
    b2c = b2.T                                                    # (C, 1)
    return wcond, w1t, w2t, b2c


# --------------------------- full wrapper forward ----------------------------
@jax.jit
def augment_model_wrapper_forward(x_nchw, sigma, params, aug_key):
    """Equivalent of AugmentModelWrapper.forward(input, sigma). NCHW in, NCHW out."""
    x = x_nchw.astype(jnp.float32)

    # 1) augment_input, augment_labels = self.augment_pipe(input)
    x_aug, labels = augment_pipe(x, aug_key)

    # 2) self.model(augment_input, sigma, augment_labels=labels)
    sigma = sigma.astype(jnp.float32)
    c_skip = 1.0 / (sigma ** 2 + 1.0)
    c_out = sigma / jnp.sqrt(sigma ** 2 + 1.0)
    c_in = 1.0 / jnp.sqrt(sigma ** 2 + 1.0)
    c_noise = jnp.log(sigma) / 4.0

    # Per-sample scalar vector: [c_skip, c_out, c_in, c_noise, labels(7)]
    scalars = jnp.concatenate(
        [c_skip[:, None], c_out[:, None], c_in[:, None], c_noise[:, None], labels],
        axis=1).reshape(-1)                                       # (N*SC_STRIDE,)

    wcond, w1t, w2t, b2c = pack_params(params)
    x_flat = x_aug.reshape(N, C, HW)                              # NCHW-native flatten

    out_flat = denoiser_pallas(scalars, x_flat, wcond, w1t, w2t, b2c)
    return out_flat.reshape(N, C, H, W)


# --------------------------- pure-JAX reference ------------------------------
def _reference_forward(x_nchw, sigma, params, aug_key):
    w_map, b_map, w1, b1, w2, b2 = params
    x = x_nchw.astype(jnp.float32)
    x_aug, labels = augment_pipe(x, aug_key)
    sigma = sigma.astype(jnp.float32)
    c_skip = 1.0 / (sigma ** 2 + 1.0)
    c_out = sigma / jnp.sqrt(sigma ** 2 + 1.0)
    c_in = 1.0 / jnp.sqrt(sigma ** 2 + 1.0)
    c_noise = jnp.log(sigma) / 4.0
    cond = jnp.concatenate([c_noise[:, None], labels], axis=1)    # (N, COND)
    hp = jax.lax.Precision.HIGHEST
    emb = jnp.maximum(jnp.dot(cond, w_map, precision=hp) + b_map, 0.0)   # (N, HID)
    x_flat = x_aug.reshape(N, C, HW)                              # (N, C, HW)
    xs = x_flat * c_in[:, None, None]
    h = (jnp.einsum('ck,ncp->nkp', w1, xs, precision=hp)
         + b1[0][None, :, None] + emb[:, :, None])
    h = jnp.maximum(h, 0.0)
    f = jnp.einsum('kc,nkp->ncp', w2, h, precision=hp) + b2[0][None, :, None]
    out = c_skip[:, None, None] * x_flat + c_out[:, None, None] * f
    return out.reshape(N, C, H, W)


# ------------------------------ parameter init -------------------------------
def init_params(key):
    ks = jax.random.split(key, 4)
    w_map = 0.1 * jax.random.normal(ks[0], (COND, HID), jnp.float32)
    b_map = jnp.zeros((1, HID), jnp.float32)
    w1 = 0.1 * jax.random.normal(ks[1], (C, HID), jnp.float32)
    b1 = jnp.zeros((1, HID), jnp.float32)
    w2 = 0.1 * jax.random.normal(ks[2], (HID, C), jnp.float32)
    b2 = jnp.zeros((1, C), jnp.float32)
    return (w_map, b_map, w1, b1, w2, b2)


if __name__ == "__main__":
    root = jax.random.PRNGKey(0)
    k_x, k_sigma, k_aug, k_param = jax.random.split(root, 4)

    # PyTorch-style NCHW input and per-sample sigma (log-normal, EDM-style).
    x_nchw = jax.random.normal(k_x, (N, C, H, W), jnp.float32)
    sigma = jnp.exp(jax.random.normal(k_sigma, (N,), jnp.float32))

    params = init_params(k_param)

    out = augment_model_wrapper_forward(x_nchw, sigma, params, k_aug)
    out = jax.block_until_ready(out)

    ref = jax.block_until_ready(_reference_forward(x_nchw, sigma, params, k_aug))
    assert out.shape == (N, C, H, W)
    # Tolerance covers MXU f32 multi-pass accumulation vs HIGHEST-precision reference.
    assert jnp.allclose(out, ref, atol=1e-2, rtol=1e-2), "mismatch vs reference"

    print("KERNEL_OK")
</pallas_src>

<mosaic_0001>
module attributes {stable_mosaic.version = 11 : i64} {
  func.func @_denoiser_kernel(%arg0: memref<22xf32, #tpu.memory_space<smem>>, %arg1: memref<2x4x256xf32, #tpu.memory_space<vmem>>, %arg2: memref<32x10xf32, #tpu.memory_space<vmem>>, %arg3: memref<32x4xf32, #tpu.memory_space<vmem>>, %arg4: memref<4x32xf32, #tpu.memory_space<vmem>>, %arg5: memref<4x1xf32, #tpu.memory_space<vmem>>, %arg6: memref<2x4x256xf32, #tpu.memory_space<vmem>>) attributes {dimension_semantics = [], scalar_prefetch = 0 : i64, scratch_operands = 0 : i64, tpu.core_type = #tpu.core_type<tc>} {
    %c0 = arith.constant 0 : index
    %c0_0 = arith.constant 0 : index
    %0 = vector.load %arg3[%c0, %c0_0] : memref<32x4xf32, #tpu.memory_space<vmem>>, vector<32x4xf32>
    %c0_1 = arith.constant 0 : index
    %c0_2 = arith.constant 0 : index
    %1 = vector.load %arg4[%c0_1, %c0_2] : memref<4x32xf32, #tpu.memory_space<vmem>>, vector<4x32xf32>
    %c0_3 = arith.constant 0 : index
    %c0_4 = arith.constant 0 : index
    %2 = vector.load %arg5[%c0_3, %c0_4] : memref<4x1xf32, #tpu.memory_space<vmem>>, vector<4x1xf32>
    %c0_5 = arith.constant 0 : index
    %c0_6 = arith.constant 0 : index
    %3 = vector.load %arg2[%c0_5, %c0_6] : memref<32x10xf32, #tpu.memory_space<vmem>>, vector<32x1xf32>
    %c0_7 = arith.constant 0 : index
    %c9 = arith.constant 9 : index
    %4 = vector.load %arg2[%c0_7, %c9] : memref<32x10xf32, #tpu.memory_space<vmem>>, vector<32x1xf32>
    %c0_8 = arith.constant 0 : index
    %5 = memref.load %arg0[%c0_8] : memref<22xf32, #tpu.memory_space<smem>>
    %c1 = arith.constant 1 : index
    %6 = memref.load %arg0[%c1] : memref<22xf32, #tpu.memory_space<smem>>
    %c2 = arith.constant 2 : index
    %7 = memref.load %arg0[%c2] : memref<22xf32, #tpu.memory_space<smem>>
    %c0_9 = arith.constant 0 : index
    %c1_10 = arith.constant 1 : index
    %8 = vector.load %arg2[%c0_9, %c1_10] : memref<32x10xf32, #tpu.memory_space<vmem>>, vector<32x1xf32>
    %c3 = arith.constant 3 : index
    %9 = memref.load %arg0[%c3] : memref<22xf32, #tpu.memory_space<smem>>
    %10 = vector.broadcast %9 : f32 to vector<32x1xf32>
    %11 = arith.mulf %8, %10 : vector<32x1xf32>
    %12 = arith.addf %3, %11 : vector<32x1xf32>
    %c0_11 = arith.constant 0 : index
    %c2_12 = arith.constant 2 : index
    %13 = vector.load %arg2[%c0_11, %c2_12] : memref<32x10xf32, #tpu.memory_space<vmem>>, vector<32x1xf32>
    %c4 = arith.constant 4 : index
    %14 = memref.load %arg0[%c4] : memref<22xf32, #tpu.memory_space<smem>>
    %15 = vector.broadcast %14 : f32 to vector<32x1xf32>
    %16 = arith.mulf %13, %15 : vector<32x1xf32>
    %17 = arith.addf %12, %16 : vector<32x1xf32>
    %c0_13 = arith.constant 0 : index
    %c3_14 = arith.constant 3 : index
    %18 = vector.load %arg2[%c0_13, %c3_14] : memref<32x10xf32, #tpu.memory_space<vmem>>, vector<32x1xf32>
    %c5 = arith.constant 5 : index
    %19 = memref.load %arg0[%c5] : memref<22xf32, #tpu.memory_space<smem>>
    %20 = vector.broadcast %19 : f32 to vector<32x1xf32>
    %21 = arith.mulf %18, %20 : vector<32x1xf32>
    %22 = arith.addf %17, %21 : vector<32x1xf32>
    %c0_15 = arith.constant 0 : index
    %c4_16 = arith.constant 4 : index
    %23 = vector.load %arg2[%c0_15, %c4_16] : memref<32x10xf32, #tpu.memory_space<vmem>>, vector<32x1xf32>
    %c6 = arith.constant 6 : index
    %24 = memref.load %arg0[%c6] : memref<22xf32, #tpu.memory_space<smem>>
    %25 = vector.broadcast %24 : f32 to vector<32x1xf32>
    %26 = arith.mulf %23, %25 : vector<32x1xf32>
    %27 = arith.addf %22, %26 : vector<32x1xf32>
    %c0_17 = arith.constant 0 : index
    %c5_18 = arith.constant 5 : index
    %28 = vector.load %arg2[%c0_17, %c5_18] : memref<32x10xf32, #tpu.memory_space<vmem>>, vector<32x1xf32>
    %c7 = arith.constant 7 : index
    %29 = memref.load %arg0[%c7] : memref<22xf32, #tpu.memory_space<smem>>
    %30 = vector.broadcast %29 : f32 to vector<32x1xf32>
    %31 = arith.mulf %28, %30 : vector<32x1xf32>
    %32 = arith.addf %27, %31 : vector<32x1xf32>
    %c0_19 = arith.constant 0 : index
    %c6_20 = arith.constant 6 : index
    %33 = vector.load %arg2[%c0_19, %c6_20] : memref<32x10xf32, #tpu.memory_space<vmem>>, vector<32x1xf32>
    %c8 = arith.constant 8 : index
    %34 = memref.load %arg0[%c8] : memref<22xf32, #tpu.memory_space<smem>>
    %35 = vector.broadcast %34 : f32 to vector<32x1xf32>
    %36 = arith.mulf %33, %35 : vector<32x1xf32>
    %37 = arith.addf %32, %36 : vector<32x1xf32>
    %c0_21 = arith.constant 0 : index
    %c7_22 = arith.constant 7 : index
    %38 = vector.load %arg2[%c0_21, %c7_22] : memref<32x10xf32, #tpu.memory_space<vmem>>, vector<32x1xf32>
    %c9_23 = arith.constant 9 : index
    %39 = memref.load %arg0[%c9_23] : memref<22xf32, #tpu.memory_space<smem>>
    %40 = vector.broadcast %39 : f32 to vector<32x1xf32>
    %41 = arith.mulf %38, %40 : vector<32x1xf32>
    %42 = arith.addf %37, %41 : vector<32x1xf32>
    %c0_24 = arith.constant 0 : index
    %c8_25 = arith.constant 8 : index
    %43 = vector.load %arg2[%c0_24, %c8_25] : memref<32x10xf32, #tpu.memory_space<vmem>>, vector<32x1xf32>
    %c10 = arith.constant 10 : index
    %44 = memref.load %arg0[%c10] : memref<22xf32, #tpu.memory_space<smem>>
    %45 = vector.broadcast %44 : f32 to vector<32x1xf32>
    %46 = arith.mulf %43, %45 : vector<32x1xf32>
    %47 = arith.addf %42, %46 : vector<32x1xf32>
    %cst = arith.constant 0.000000e+00 : f32
    %48 = vector.broadcast %cst : f32 to vector<32x1xf32>
    %49 = arith.maximumf %47, %48 : vector<32x1xf32>
    %c0_26 = arith.constant 0 : index
    %c0_27 = arith.constant 0 : index
    %c0_28 = arith.constant 0 : index
    %50 = vector.load %arg1[%c0_26, %c0_27, %c0_28] : memref<2x4x256xf32, #tpu.memory_space<vmem>>, vector<1x4x256xf32>
    %51 = vector.shape_cast %50 : vector<1x4x256xf32> to vector<4x256xf32>
    %52 = vector.broadcast %7 : f32 to vector<4x256xf32>
    %53 = arith.mulf %51, %52 : vector<4x256xf32>
    %cst_29 = arith.constant dense<0.000000e+00> : vector<32x256xf32>
    %54 = tpu.matmul %0, %53, %cst_29 {dimension_numbers = #tpu.dot_dimension_numbers<[1], [0], [0], [1], [0, 0, 1, 1], [], []>} : vector<32x4xf32>, vector<4x256xf32>, vector<32x256xf32> -> vector<32x256xf32>
    %55 = arith.addf %4, %49 : vector<32x1xf32>
    %56 = vector.broadcast %55 : vector<32x1xf32> to vector<32x256xf32>
    %57 = arith.addf %54, %56 : vector<32x256xf32>
    %cst_30 = arith.constant 0.000000e+00 : f32
    %58 = vector.broadcast %cst_30 : f32 to vector<32x256xf32>
    %59 = arith.maximumf %57, %58 : vector<32x256xf32>
    %cst_31 = arith.constant dense<0.000000e+00> : vector<4x256xf32>
    %60 = tpu.matmul %1, %59, %cst_31 {dimension_numbers = #tpu.dot_dimension_numbers<[1], [0], [0], [1], [0, 0, 1, 1], [], []>} : vector<4x32xf32>, vector<32x256xf32>, vector<4x256xf32> -> vector<4x256xf32>
    %61 = vector.broadcast %2 : vector<4x1xf32> to vector<4x256xf32>
    %62 = arith.addf %60, %61 : vector<4x256xf32>
    %63 = vector.broadcast %5 : f32 to vector<4x256xf32>
    %64 = arith.mulf %63, %51 : vector<4x256xf32>
    %65 = vector.broadcast %6 : f32 to vector<4x256xf32>
    %66 = arith.mulf %65, %62 : vector<4x256xf32>
    %67 = arith.addf %64, %66 : vector<4x256xf32>
    %c0_32 = arith.constant 0 : index
    %c0_33 = arith.constant 0 : index
    %c0_34 = arith.constant 0 : index
    %68 = vector.load %arg6[%c0_32, %c0_33, %c0_34] : memref<2x4x256xf32, #tpu.memory_space<vmem>>, vector<1x4x256xf32>
    %69 = vector.shape_cast %68 : vector<1x4x256xf32> to vector<4x256xf32>
    %70 = vector.shape_cast %67 : vector<4x256xf32> to vector<1x4x256xf32>
    tpu.vector_store %arg6[%c0_32, %c0_33, %c0_34], %70 {strides = array<i32>} : memref<2x4x256xf32, #tpu.memory_space<vmem>>, vector<1x4x256xf32>,
    %c11 = arith.constant 11 : index
    %71 = memref.load %arg0[%c11] : memref<22xf32, #tpu.memory_space<smem>>
    %c12 = arith.constant 12 : index
    %72 = memref.load %arg0[%c12] : memref<22xf32, #tpu.memory_space<smem>>
    %c13 = arith.constant 13 : index
    %73 = memref.load %arg0[%c13] : memref<22xf32, #tpu.memory_space<smem>>
    %c0_35 = arith.constant 0 : index
    %c1_36 = arith.constant 1 : index
    %74 = vector.load %arg2[%c0_35, %c1_36] : memref<32x10xf32, #tpu.memory_space<vmem>>, vector<32x1xf32>
    %c14 = arith.constant 14 : index
    %75 = memref.load %arg0[%c14] : memref<22xf32, #tpu.memory_space<smem>>
    %76 = vector.broadcast %75 : f32 to vector<32x1xf32>
    %77 = arith.mulf %74, %76 : vector<32x1xf32>
    %78 = arith.addf %3, %77 : vector<32x1xf32>
    %c0_37 = arith.constant 0 : index
    %c2_38 = arith.constant 2 : index
    %79 = vector.load %arg2[%c0_37, %c2_38] : memref<32x10xf32, #tpu.memory_space<vmem>>, vector<32x1xf32>
    %c15 = arith.constant 15 : index
    %80 = memref.load %arg0[%c15] : memref<22xf32, #tpu.memory_space<smem>>
    %81 = vector.broadcast %80 : f32 to vector<32x1xf32>
    %82 = arith.mulf %79, %81 : vector<32x1xf32>
    %83 = arith.addf %78, %82 : vector<32x1xf32>
    %c0_39 = arith.constant 0 : index
    %c3_40 = arith.constant 3 : index
    %84 = vector.load %arg2[%c0_39, %c3_40] : memref<32x10xf32, #tpu.memory_space<vmem>>, vector<32x1xf32>
    %c16 = arith.constant 16 : index
    %85 = memref.load %arg0[%c16] : memref<22xf32, #tpu.memory_space<smem>>
    %86 = vector.broadcast %85 : f32 to vector<32x1xf32>
    %87 = arith.mulf %84, %86 : vector<32x1xf32>
    %88 = arith.addf %83, %87 : vector<32x1xf32>
    %c0_41 = arith.constant 0 : index
    %c4_42 = arith.constant 4 : index
    %89 = vector.load %arg2[%c0_41, %c4_42] : memref<32x10xf32, #tpu.memory_space<vmem>>, vector<32x1xf32>
    %c17 = arith.constant 17 : index
    %90 = memref.load %arg0[%c17] : memref<22xf32, #tpu.memory_space<smem>>
    %91 = vector.broadcast %90 : f32 to vector<32x1xf32>
    %92 = arith.mulf %89, %91 : vector<32x1xf32>
    %93 = arith.addf %88, %92 : vector<32x1xf32>
    %c0_43 = arith.constant 0 : index
    %c5_44 = arith.constant 5 : index
    %94 = vector.load %arg2[%c0_43, %c5_44] : memref<32x10xf32, #tpu.memory_space<vmem>>, vector<32x1xf32>
    %c18 = arith.constant 18 : index
    %95 = memref.load %arg0[%c18] : memref<22xf32, #tpu.memory_space<smem>>
    %96 = vector.broadcast %95 : f32 to vector<32x1xf32>
    %97 = arith.mulf %94, %96 : vector<32x1xf32>
    %98 = arith.addf %93, %97 : vector<32x1xf32>
    %c0_45 = arith.constant 0 : index
    %c6_46 = arith.constant 6 : index
    %99 = vector.load %arg2[%c0_45, %c6_46] : memref<32x10xf32, #tpu.memory_space<vmem>>, vector<32x1xf32>
    %c19 = arith.constant 19 : index
    %100 = memref.load %arg0[%c19] : memref<22xf32, #tpu.memory_space<smem>>
    %101 = vector.broadcast %100 : f32 to vector<32x1xf32>
    %102 = arith.mulf %99, %101 : vector<32x1xf32>
    %103 = arith.addf %98, %102 : vector<32x1xf32>
    %c0_47 = arith.constant 0 : index
    %c7_48 = arith.constant 7 : index
    %104 = vector.load %arg2[%c0_47, %c7_48] : memref<32x10xf32, #tpu.memory_space<vmem>>, vector<32x1xf32>
    %c20 = arith.constant 20 : index
    %105 = memref.load %arg0[%c20] : memref<22xf32, #tpu.memory_space<smem>>
    %106 = vector.broadcast %105 : f32 to vector<32x1xf32>
    %107 = arith.mulf %104, %106 : vector<32x1xf32>
    %108 = arith.addf %103, %107 : vector<32x1xf32>
    %c0_49 = arith.constant 0 : index
    %c8_50 = arith.constant 8 : index
    %109 = vector.load %arg2[%c0_49, %c8_50] : memref<32x10xf32, #tpu.memory_space<vmem>>, vector<32x1xf32>
    %c21 = arith.constant 21 : index
    %110 = memref.load %arg0[%c21] : memref<22xf32, #tpu.memory_space<smem>>
    %111 = vector.broadcast %110 : f32 to vector<32x1xf32>
    %112 = arith.mulf %109, %111 : vector<32x1xf32>
    %113 = arith.addf %108, %112 : vector<32x1xf32>
    %cst_51 = arith.constant 0.000000e+00 : f32
    %114 = vector.broadcast %cst_51 : f32 to vector<32x1xf32>
    %115 = arith.maximumf %113, %114 : vector<32x1xf32>
    %c1_52 = arith.constant 1 : index
    %c0_53 = arith.constant 0 : index
    %c0_54 = arith.constant 0 : index
    %116 = vector.load %arg1[%c1_52, %c0_53, %c0_54] : memref<2x4x256xf32, #tpu.memory_space<vmem>>, vector<1x4x256xf32>
    %117 = vector.shape_cast %116 : vector<1x4x256xf32> to vector<4x256xf32>
    %118 = vector.broadcast %73 : f32 to vector<4x256xf32>
    %119 = arith.mulf %117, %118 : vector<4x256xf32>
    %cst_55 = arith.constant dense<0.000000e+00> : vector<32x256xf32>
    %120 = tpu.matmul %0, %119, %cst_55 {dimension_numbers = #tpu.dot_dimension_numbers<[1], [0], [0], [1], [0, 0, 1, 1], [], []>} : vector<32x4xf32>, vector<4x256xf32>, vector<32x256xf32> -> vector<32x256xf32>
    %121 = arith.addf %4, %115 : vector<32x1xf32>
    %122 = vector.broadcast %121 : vector<32x1xf32> to vector<32x256xf32>
    %123 = arith.addf %120, %122 : vector<32x256xf32>
    %cst_56 = arith.constant 0.000000e+00 : f32
    %124 = vector.broadcast %cst_56 : f32 to vector<32x256xf32>
    %125 = arith.maximumf %123, %124 : vector<32x256xf32>
    %cst_57 = arith.constant dense<0.000000e+00> : vector<4x256xf32>
    %126 = tpu.matmul %1, %125, %cst_57 {dimension_numbers = #tpu.dot_dimension_numbers<[1], [0], [0], [1], [0, 0, 1, 1], [], []>} : vector<4x32xf32>, vector<32x256xf32>, vector<4x256xf32> -> vector<4x256xf32>
    %127 = vector.broadcast %2 : vector<4x1xf32> to vector<4x256xf32>
    %128 = arith.addf %126, %127 : vector<4x256xf32>
    %129 = vector.broadcast %71 : f32 to vector<4x256xf32>
    %130 = arith.mulf %129, %117 : vector<4x256xf32>
    %131 = vector.broadcast %72 : f32 to vector<4x256xf32>
    %132 = arith.mulf %131, %128 : vector<4x256xf32>
    %133 = arith.addf %130, %132 : vector<4x256xf32>
    %c1_58 = arith.constant 1 : index
    %c0_59 = arith.constant 0 : index
    %c0_60 = arith.constant 0 : index
    %134 = vector.load %arg6[%c1_58, %c0_59, %c0_60] : memref<2x4x256xf32, #tpu.memory_space<vmem>>, vector<1x4x256xf32>
    %135 = vector.shape_cast %134 : vector<1x4x256xf32> to vector<4x256xf32>
    %136 = vector.shape_cast %133 : vector<4x256xf32> to vector<1x4x256xf32>
    tpu.vector_store %arg6[%c1_58, %c0_59, %c0_60], %136 {strides = array<i32>} : memref<2x4x256xf32, #tpu.memory_space<vmem>>, vector<1x4x256xf32>,
    return
  }
}

</mosaic_0001>

<bundles_post_ra>
// kernel: augment_model_wrapper_forward.1
= control target key start
LH: loop header
LB: loop body
LE: loop exit
PB: predicated region body
PF: predicated region fallthrough
CT: control target
= control target key end

     0   :  { %11 = vsyncpa [#allocation3], 0  ;;  %s1338_s0 = inlined_call_operand.vmem [shape: f32[22], index: 0, kind: input, shape index: {}]   ;;  %s1339_s1 = inlined_call_operand.vmem [shape: f32[2,4,256], index: 1, kind: input, shape index: {}]   ;;  %s1340_s2 = inlined_call_operand.vmem [shape: f32[32,10], index: 2, kind: input, shape index: {}]   ;;  %s1341_s3 = inlined_call_operand.vmem [shape: f32[32,4], index: 3, kind: input, shape index: {}]   ;;  %s1342_s4 = inlined_call_operand.vmem [shape: f32[4,32], index: 4, kind: input, shape index: {}]   ;;  %s1343_s5 = inlined_call_operand.vmem [shape: f32[4,1], index: 5, kind: input, shape index: {}]   ;;  %s1344_s6 = inlined_call_operand.vmem [shape: f32[2,4,256], index: 6, kind: output, shape index: {}]  }
   0x1   :  { %s18_s23 = sshll.u32 %s1338_s0, 4  ;;  %s19_s23 = int_to_ptr.vmem [resolvable:$true] %s18_s23 }
   0x2   :  { %s1019_s24 = scalar_lea.vmem %s19_s23, 16  ;;  %p1024_p1 = scmp.lt.s32.totalorder %s19_s23, %s19_s23 }
   0x3   :  { %p1020_p0 = scmp.ne.s32.totalorder %s19_s23, %s1019_s24  ;;  %p1025_p2 = scmp.lt.s32.totalorder %s1019_s24, %s1019_s24 }
   0x5   :  { %p1026_p3 = por %p1025_p2, %p1024_p1 }
   0x7   :  { %p1027_p4 = pnand %p1026_p3, %p1020_p0 }
   0x9   :  { %1030 = shalt.err (!%p1027_p4)
}
   0xa   :  { %s1033_s25 = smov [#allocation2]  }
   0xb   :  { %21 = dma.vmem_to_smem %s19_s23, 16, %s1033_s25, [#allocation3]  }
   0xc   :  { %1031 = dma.done.wait [#allocation3], 16  }
   0xd   :  { %1032 = vsyncadd [#allocation3], 4294967280 }
   0xe   :  { %35 = sfence }
   0xf   :  { %s969_s26 = sld [smem:[#allocation2 + $0x4]]  ;;  %v1087_v0 = vld [vmem:[%s1340_s2 + $0x18] sm:$0xff]  ;;  %v1092_v2 = vld [vmem:[%s1340_s2 + $0x8] sm:$0xff]  ;;  %v1098_v5 = vld [vmem:[%s1340_s2 + $0x10] sm:$0xff]  ;;  %s1034_s10 = smov 126   ;;  %v1042_v42 = vmov 0.0  }
  0x10   :  { %s968_s27 = sld [smem:[#allocation2 + $0x3]]  ;;  %s1035_s11 = smov 127   ;;  %v1112_v12 = vld [vmem:[%s1340_s2] sm:$0xff]  ;;  %388 = vmatprep.mubr.f32.mxu0 %v1042_v42  ;;  %494 = vmatprep.mubr.f32.mxu1 %v1042_v42  ;;  %vm319_vm0 = vcmask 1043456   ;;  %vm306_vm1 = vcmask 31744   ;;  %v1189_v50 = vld [vmem:[%s1341_s3 + $0x8] sm:$0xff] }
  0x11   :  { %s970_s28 = sld [smem:[#allocation2 + $0x5]]  ;;  %s1036_s15 = smov 125   ;;  %v1171_v45 = vld [vmem:[%s1339_s1] sm:$0xff]  ;;  %v1197_v51 = vld [vmem:[%s1341_s3 + $0x10] sm:$0xff]  ;;  %v1205_v52 = vld [vmem:[%s1341_s3 + $0x18] sm:$0xff]  ;;  %vm426_vm2 = vcmask 261120  }
  0x12   :  { %s971_s12 = sld [smem:[#allocation2 + $0x6]]  ;;  %s1037_s2 = smov 124   ;;  %v1179_v49 = vld [vmem:[%s1341_s3] sm:$0xff] }
  0x13   :  { %s972_s16 = sld [smem:[#allocation2 + $0x7]]  ;;  %s1038_s18 = smov 123  }
  0x14   :  { %s973_s17 = sld [smem:[#allocation2 + $0x8]]  ;;  %s1039_s20 = smov 122  }
  0x15   :  { %v76_v1 = vstv %s969_s26  ;;  %s974_s19 = sld [smem:[#allocation2 + $0x9]]  ;;  %s1040_s22 = smov 121  }
  0x16   :  { %v80_v3 = vmul.f32 %v76_v1, %v1087_v0  ;;  %v50_v4 = vstv %s968_s27  ;;  %v79_v11 = vmul.f32 %v76_v1, %v1098_v5  ;;  %v78_v13 = vmul.f32 %v76_v1, %v1092_v2  ;;  %s975_s21 = sld [smem:[#allocation2 + $0xa]]  ;;  %s1041_s23 = smov 120  }
  0x17   :  { %v54_v6 = vmul.f32 %v50_v4, %v1087_v0  ;;  %v52_v7 = vmul.f32 %v50_v4, %v1092_v2  ;;  %v53_v8 = vmul.f32 %v50_v4, %v1098_v5  ;;  %v102_v9 = vstv %s970_s28  ;;  %s967_s24 = sld [smem:[#allocation2 + $0x2]]  ;;  %s1044_s3 = smov 9  }
  0x18   :  { %91 = vrot.lane.b32.xlu1 %v80_v3, %s1034_s10  ;;  %v106_v10 = vmul.f32 %v102_v9, %v1087_v0  ;;  %v51_v14 = vmul.f32 %v50_v4, %v1112_v12  ;;  %v128_v15 = vstv %s971_s12  ;;  %v105_v17 = vmul.f32 %v102_v9, %v1098_v5  ;;  %s986_s12 = sld [smem:[#allocation2 + $0xe]] }
  0x19   :  { %65 = vrot.lane.b32.xlu0 %v54_v6, %s1035_s11  ;;  %v132_v16 = vmul.f32 %v128_v15, %v1087_v0  ;;  %v104_v18 = vmul.f32 %v102_v9, %v1092_v2  ;;  %v77_v19 = vmul.f32 %v76_v1, %v1112_v12  ;;  %v154_v20 = vstv %s972_s16  ;;  %s987_s13 = sld [smem:[#allocation2 + $0xf]] }
  0x1a   :  { %v158_v21 = vmul.f32 %v154_v20, %v1087_v0  ;;  %v131_v22 = vmul.f32 %v128_v15, %v1098_v5  ;;  %v130_v23 = vmul.f32 %v128_v15, %v1092_v2  ;;  %v103_v24 = vmul.f32 %v102_v9, %v1112_v12  ;;  %s988_s14 = sld [smem:[#allocation2 + $0x10]] }
  0x1b   :  { %v180_v25 = vstv %s973_s17  ;;  %v157_v27 = vmul.f32 %v154_v20, %v1098_v5  ;;  %v156_v28 = vmul.f32 %v154_v20, %v1092_v2  ;;  %v129_v29 = vmul.f32 %v128_v15, %v1112_v12  ;;  %s989_s16 = sld [smem:[#allocation2 + $0x11]] }
  0x1c   :  { %61 = vrot.lane.b32.xlu1 %v52_v7, %s1035_s11  ;;  %v184_v26 = vmul.f32 %v180_v25, %v1087_v0  ;;  %v206_v30 = vstv %s974_s19  ;;  %v183_v32 = vmul.f32 %v180_v25, %v1098_v5  ;;  %v182_v33 = vmul.f32 %v180_v25, %v1092_v2  ;;  %s990_s17 = sld [smem:[#allocation2 + $0x12]] }
  0x1d   :  { %63 = vrot.lane.b32.xlu0 %v53_v8, %s1035_s11  ;;  %v210_v31 = vmul.f32 %v206_v30, %v1087_v0  ;;  %v155_v34 = vmul.f32 %v154_v20, %v1112_v12  ;;  %v232_v35 = vstv %s975_s21  ;;  %v209_v37 = vmul.f32 %v206_v30, %v1098_v5  ;;  %s991_s19 = sld [smem:[#allocation2 + $0x13]] }
  0x1e   :  { %v236_v36 = vmul.f32 %v232_v35, %v1087_v0  ;;  %v208_v38 = vmul.f32 %v206_v30, %v1092_v2  ;;  %v181_v39 = vmul.f32 %v180_v25, %v1112_v12  ;;  %v207_v40 = vmul.f32 %v206_v30, %v1112_v12  ;;  %s984_s25 = sld [smem:[#allocation2 + $0xc]] }
  0x1f   :  { %v235_v41 = vmul.f32 %v232_v35, %v1098_v5  ;;  %v233_v43 = vmul.f32 %v232_v35, %v1112_v12  ;;  %v234_v44 = vmul.f32 %v232_v35, %v1092_v2  ;;  %v262_v46 = vstv %s967_s24  ;;  %s983_s26 = sld [smem:[#allocation2 + $0xb]] }
  0x20   :  { %117 = vrot.lane.b32.xlu1 %v106_v10, %s1036_s15  ;;  %v263_v47 = vmul.f32 %v262_v46, %v1171_v45 }
  0x21   :  { %89 = vrot.lane.b32.xlu0 %v79_v11, %s1034_s10 }
  0x22   :  { %v305_v48 = vcombine.high %v263_v47, %v263_v47 }
  0x24   :  { %87 = vrot.lane.b32.xlu1 %v78_v13, %s1034_s10  ;;  %976 = vmatprep.subr.msk.mxu0 %vm319_vm0, %v305_v48 }
  0x25   :  { %59 = vrot.lane.b32.xlu0 %v51_v14, %s1035_s11  ;;  %977 = vmatpush1.msk.msra.mxu0 %vm319_vm0, %v263_v47 }
  0x26   :  { %978 = vmatmul.mubr.msk.f32.vlgmr.msra.gmra.mxu0 %vm306_vm1, %v1179_v49 }
  0x27   :  { %394 = vmatprep.mubr.f32.mxu0 %v1042_v42 }
  0x28   :  { %143 = vrot.lane.b32.xlu1 %v132_v16, %s1037_s2 }
  0x29   :  { %115 = vrot.lane.b32.xlu0 %v105_v17, %s1036_s15 }
  0x2a   :  { %979 = vmatmul.mubr.msk.f32.gmra.mxu0 %vm306_vm1, %v1189_v50 }
  0x2b   :  { %400 = vmatprep.mubr.f32.mxu0 %v1042_v42 }
  0x2c   :  { %113 = vrot.lane.b32.xlu1 %v104_v18, %s1036_s15 }
  0x2d   :  { %85 = vrot.lane.b32.xlu0 %v77_v19, %s1034_s10  ;;  %v1043_v19 = vmov 9  }
  0x2e   :  { %980 = vmatmul.mubr.msk.f32.gmra.mxu0 %vm306_vm1, %v1197_v51  ;;  %1016 = vset.pattern.permute.xlu0 %v1043_v19 }
  0x2f   :  { %406 = vmatprep.mubr.f32.mxu0 %v1042_v42  ;;  %1017 = vset.pattern.permute.xlu1 %v1043_v19  ;;  %v546_v19 = vstv %s987_s13 }
  0x30   :  { %169 = vrot.lane.b32.xlu1 %v158_v21, %s1038_s18 }
  0x31   :  { %141 = vrot.lane.b32.xlu0 %v131_v22, %s1037_s2 }
  0x32   :  { %981 = vmatmul.mubr.msk.f32.gmra.mxu0 %vm306_vm1, %v1205_v52 }
  0x33   :  { %942 = vmatprep.mubr.f32.mxu0 %v1042_v42 }
  0x34   :  { %139 = vrot.lane.b32.xlu1 %v130_v23, %s1037_s2 }
  0x35   :  { %111 = vrot.lane.b32.xlu0 %v103_v24, %s1036_s15 }
  0x38   :  { %195 = vrot.lane.b32.xlu1 %v184_v26, %s1039_s20 }
  0x39   :  { %167 = vrot.lane.b32.xlu0 %v157_v27, %s1038_s18 }
  0x3c   :  { %165 = vrot.lane.b32.xlu1 %v156_v28, %s1038_s18 }
  0x3d   :  { %137 = vrot.lane.b32.xlu0 %v129_v29, %s1037_s2 }
  0x40   :  { %221 = vrot.lane.b32.xlu1 %v210_v31, %s1040_s22 }
  0x41   :  { %193 = vrot.lane.b32.xlu0 %v183_v32, %s1039_s20 }
  0x44   :  { %191 = vrot.lane.b32.xlu1 %v182_v33, %s1039_s20 }
  0x45   :  { %163 = vrot.lane.b32.xlu0 %v155_v34, %s1038_s18 }
  0x48   :  { %247 = vrot.lane.b32.xlu1 %v236_v36, %s1041_s23 }
  0x49   :  { %219 = vrot.lane.b32.xlu0 %v209_v37, %s1040_s22 }
  0x4c   :  { %217 = vrot.lane.b32.xlu1 %v208_v38, %s1040_s22 }
  0x4d   :  { %189 = vrot.lane.b32.xlu0 %v181_v39, %s1039_s20 }
  0x50   :  { %215 = vrot.lane.b32.xlu1 %v207_v40, %s1040_s22 }
  0x51   :  { %245 = vrot.lane.b32.xlu0 %v235_v41, %s1041_s23 }
  0x54   :  { %241 = vrot.lane.b32.xlu1 %v233_v43, %s1041_s23 }
  0x55   :  { %243 = vrot.lane.b32.xlu0 %v234_v44, %s1041_s23 }
  0x8a   :  { %v92_v53 = vpop.permute.xlu1 %91 }
  0x8b   :  { %v66_v54 = vpop.permute.xlu0 %65 }
  0x8c   :  { %v74_v9 = vadd.f32 %v66_v54, %v1087_v0 }
  0x8e   :  { %v62_v55 = vpop.permute.xlu1 %61  ;;  %v100_v13 = vadd.f32 %v92_v53, %v74_v9 }
  0x8f   :  { %v64_v56 = vpop.permute.xlu0 %63  ;;  %v72_v28 = vadd.f32 %v62_v55, %v1092_v2 }
  0x90   :  { %v73_v21 = vadd.f32 %v64_v56, %v1098_v5 }
  0x92   :  { %v118_v57 = vpop.permute.xlu1 %117 }
  0x93   :  { %v90_v58 = vpop.permute.xlu0 %89  ;;  %v126_v15 = vadd.f32 %v118_v57, %v100_v13 }
  0x94   :  { %v99_v25 = vadd.f32 %v90_v58, %v73_v21  ;;  %v550_v21 = vmul.f32 %v546_v19, %v1087_v0 }
  0x96   :  { %v88_v59 = vpop.permute.xlu1 %87 }
  0x97   :  { %v60_v60 = vpop.permute.xlu0 %59  ;;  %v98_v34 = vadd.f32 %v88_v59, %v72_v28 }
  0x98   :  { %v71_v26 = vadd.f32 %v60_v60, %v1112_v12 }
  0x9a   :  { %v144_v61 = vpop.permute.xlu1 %143 }
  0x9b   :  { %v116_v62 = vpop.permute.xlu0 %115  ;;  %v152_v17 = vadd.f32 %v144_v61, %v126_v15 }
  0x9c   :  { %v125_v29 = vadd.f32 %v116_v62, %v99_v25  ;;  %v548_v25 = vmul.f32 %v546_v19, %v1092_v2 }
  0x9e   :  { %v114_v63 = vpop.permute.xlu1 %113 }
  0x9f   :  { %v86_v1 = vpop.permute.xlu0 %85  ;;  %v124_v38 = vadd.f32 %v114_v63, %v98_v34 }
  0xa0   :  { %v97_v31 = vadd.f32 %v86_v1, %v71_v26 }
  0xa2   :  { %v170_v3 = vpop.permute.xlu1 %169 }
  0xa3   :  { %v142_v4 = vpop.permute.xlu0 %141  ;;  %v178_v20 = vadd.f32 %v170_v3, %v152_v17 }
  0xa4   :  { %v151_v35 = vadd.f32 %v142_v4, %v125_v29 }
  0xa6   :  { %v140_v6 = vpop.permute.xlu1 %139 }
  0xa7   :  { %v112_v7 = vpop.permute.xlu0 %111  ;;  %v150_v44 = vadd.f32 %v140_v6, %v124_v38 }
  0xa8   :  { %v123_v36 = vadd.f32 %v112_v7, %v97_v31  ;;  %v547_v31 = vmul.f32 %v546_v19, %v1112_v12 }
  0xaa   :  { %v196_v8 = vpop.permute.xlu1 %195 }
  0xab   :  { %v168_v10 = vpop.permute.xlu0 %167  ;;  %v204_v23 = vadd.f32 %v196_v8, %v178_v20 }
  0xac   :  { %v177_v39 = vadd.f32 %v168_v10, %v151_v35 }
  0xae   :  { %v166_v11 = vpop.permute.xlu1 %165 }
  0xaf   :  { %v138_v14 = vpop.permute.xlu0 %137  ;;  %v176_v48 = vadd.f32 %v166_v11, %v150_v44 }
  0xb0   :  { %v149_v41 = vadd.f32 %v138_v14, %v123_v36  ;;  %v520_v14 = vstv %s986_s12 }
  0xb1   :  { %v523_v17 = vmul.f32 %v520_v14, %v1098_v5  ;;  %v522_v20 = vmul.f32 %v520_v14, %v1092_v2  ;;  %v521_v26 = vmul.f32 %v520_v14, %v1112_v12 }
  0xb2   :  { %v222_v16 = vpop.permute.xlu1 %221 }
  0xb3   :  { %v194_v18 = vpop.permute.xlu0 %193  ;;  %v230_v27 = vadd.f32 %v222_v16, %v204_v23 }
  0xb4   :  { %v203_v46 = vadd.f32 %v194_v18, %v177_v39  ;;  %v524_v18 = vmul.f32 %v520_v14, %v1087_v0 }
  0xb6   :  { %v192_v22 = vpop.permute.xlu1 %191 }
  0xb7   :  { %v164_v24 = vpop.permute.xlu0 %163  ;;  %v202_v57 = vadd.f32 %v192_v22, %v176_v48  ;;  %v572_v22 = vstv %s988_s14 }
  0xb8   :  { %v175_v47 = vadd.f32 %v164_v24, %v149_v41  ;;  %v576_v23 = vmul.f32 %v572_v22, %v1087_v0  ;;  %v549_v24 = vmul.f32 %v546_v19, %v1098_v5  ;;  %v575_v29 = vmul.f32 %v572_v22, %v1098_v5 }
  0xb9   :  { %v573_v36 = vmul.f32 %v572_v22, %v1112_v12 }
  0xba   :  { %v248_v30 = vpop.permute.xlu1 %247 }
  0xbb   :  { %v256_v32 = vadd.f32 %v248_v30, %v230_v27  ;;  %v220_v33 = vpop.permute.xlu0 %219  ;;  %v598_v27 = vstv %s989_s16  ;;  %v574_v30 = vmul.f32 %v572_v22, %v1092_v2 }
  0xbc   :  { %v229_v53 = vadd.f32 %v220_v33, %v203_v46  ;;  %v602_v28 = vmul.f32 %v598_v27, %v1087_v0  ;;  %v601_v34 = vmul.f32 %v598_v27, %v1098_v5  ;;  %v600_v35 = vmul.f32 %v598_v27, %v1092_v2 }
  0xbd   :  { %v260_v37 = vmax.f32 %v256_v32, 0.0  ;;  %v624_v32 = vstv %s990_s17  ;;  %v599_v41 = vmul.f32 %v598_v27, %v1112_v12 }
  0xbe   :  { %v218_v40 = vpop.permute.xlu1 %217  ;;  %v628_v33 = vmul.f32 %v624_v32, %v1087_v0  ;;  %v627_v39 = vmul.f32 %v624_v32, %v1098_v5  ;;  %v625_v48 = vmul.f32 %v624_v32, %v1112_v12 }
  0xbf   :  { %v190_v43 = vpop.permute.xlu0 %189  ;;  %274 = vrot.lane.b32.xlu0 %v260_v37, %s1044_s3  ;;  %v228_v60 = vadd.f32 %v218_v40, %v202_v57  ;;  %v650_v37 = vstv %s991_s19  ;;  %v626_v40 = vmul.f32 %v624_v32, %v1092_v2 }
  0xc0   :  { %v201_v55 = vadd.f32 %v190_v43, %v175_v47  ;;  %v654_v38 = vmul.f32 %v650_v37, %v1087_v0  ;;  %v653_v46 = vmul.f32 %v650_v37, %v1098_v5  ;;  %v652_v47 = vmul.f32 %v650_v37, %v1092_v2 }
  0xc1   :  { %v651_v57 = vmul.f32 %v650_v37, %v1112_v12 }
  0xc2   :  { %v216_v54 = vpop.permute.xlu1 %215 }
  0xc3   :  { %v246_v56 = vpop.permute.xlu0 %245  ;;  %v227_v59 = vadd.f32 %v216_v54, %v201_v55 }
  0xc4   :  { %v255_v58 = vadd.f32 %v246_v56, %v229_v53 }
  0xc6   :  { %v259_v61 = vmax.f32 %v255_v58, 0.0  ;;  %v242_v62 = vpop.permute.xlu1 %241 }
  0xc7   :  { %v253_v63 = vadd.f32 %v242_v62, %v227_v59  ;;  %v244_v1 = vpop.permute.xlu0 %243 }
  0xc8   :  { %v254_v3 = vadd.f32 %v244_v1, %v228_v60  ;;  %272 = vrot.lane.b32.xlu1 %v259_v61, %s1044_s3 }
  0xc9   :  { %v257_v4 = vmax.f32 %v253_v63, 0.0 }
  0xca   :  { %v258_v6 = vmax.f32 %v254_v3, 0.0 }
  0xcc   :  { %268 = vrot.lane.b32.xlu1 %v257_v4, %s1044_s3  ;;  %270 = vrot.lane.b32.xlu0 %v258_v6, %s1044_s3 }
  0xe6   :  { %v390_v62 = vpop.f32.mrf.mxu0 }
  0xe8   :  { %v392_v63 = vpop.f32.mrf.mxu0 }
  0xea   :  { %v396_v1 = vpop.f32.mrf.mxu0 }
  0xec   :  { %v398_v3 = vpop.f32.mrf.mxu0 }
  0xee   :  { %v402_v4 = vpop.f32.mrf.mxu0 }
  0xf0   :  { %v404_v6 = vpop.f32.mrf.mxu0 }
 0x131   :  { %v275_v7 = vpop.permute.xlu0 %274 }
 0x132   :  { %v283_v8 = vadd.f32 %v275_v7, %v1087_v0  ;;  %v408_v7 = vpop.f32.mrf.mxu0 }
 0x134   :  { %301 = vperm.xlu0 %1016, %v283_v8   ;;  %v410_v8 = vpop.f32.mrf.mxu0 }
 0x13a   :  { %v273_v9 = vpop.permute.xlu1 %272 }
 0x13b   :  { %v282_v10 = vadd.f32 %v273_v9, %v1098_v5 }
 0x13d   :  { %296 = vperm.xlu1 %1017, %v282_v10  }
 0x13e   :  { %v269_v11 = vpop.permute.xlu1 %268  ;;  %v271_v13 = vpop.permute.xlu0 %270 }
 0x13f   :  { %v280_v15 = vadd.f32 %v269_v11, %v1112_v12  ;;  %v281_v16 = vadd.f32 %v271_v13, %v1092_v2 }
 0x141   :  { %286 = vperm.xlu0 %1016, %v280_v15   ;;  %291 = vperm.xlu1 %1017, %v281_v16  }
 0x145   :  { %533 = vrot.lane.b32.xlu0 %v523_v17, %s1035_s11  ;;  %535 = vrot.lane.b32.xlu1 %v524_v18, %s1035_s11  ;;  %v1289_v18 = vld [vmem:[%s1339_s1 + $0x8] sm:$0xff] }
 0x149   :  { %531 = vrot.lane.b32.xlu0 %v522_v20, %s1035_s11  ;;  %561 = vrot.lane.b32.xlu1 %v550_v21, %s1034_s10 }
 0x14d   :  { %587 = vrot.lane.b32.xlu0 %v576_v23, %s1036_s15  ;;  %559 = vrot.lane.b32.xlu1 %v549_v24, %s1034_s10 }
 0x151   :  { %557 = vrot.lane.b32.xlu0 %v548_v25, %s1034_s10  ;;  %529 = vrot.lane.b32.xlu1 %v521_v26, %s1035_s11  ;;  %s992_s11 = sld [smem:[#allocation2 + $0x14]] }
 0x155   :  { %613 = vrot.lane.b32.xlu0 %v602_v28, %s1037_s2  ;;  %585 = vrot.lane.b32.xlu1 %v575_v29, %s1036_s15 }
 0x157   :  { %v676_v43 = vstv %s992_s11 }
 0x158   :  { %v680_v44 = vmul.f32 %v676_v43, %v1087_v0  ;;  %v679_v55 = vmul.f32 %v676_v43, %v1098_v5  ;;  %v678_v56 = vmul.f32 %v676_v43, %v1092_v2  ;;  %v677_v58 = vmul.f32 %v676_v43, %v1112_v12 }
 0x159   :  { %583 = vrot.lane.b32.xlu0 %v574_v30, %s1036_s15  ;;  %555 = vrot.lane.b32.xlu1 %v547_v31, %s1034_s10  ;;  %s993_s10 = sld [smem:[#allocation2 + $0x15]] }
 0x15d   :  { %639 = vrot.lane.b32.xlu0 %v628_v33, %s1038_s18  ;;  %611 = vrot.lane.b32.xlu1 %v601_v34, %s1037_s2 }
 0x15f   :  { %v702_v53 = vstv %s993_s10 }
 0x160   :  { %v706_v54 = vmul.f32 %v702_v53, %v1087_v0  ;;  %v705_v59 = vmul.f32 %v702_v53, %v1098_v5  ;;  %v703_v60 = vmul.f32 %v702_v53, %v1112_v12  ;;  %v704_v61 = vmul.f32 %v702_v53, %v1092_v2 }
 0x161   :  { %609 = vrot.lane.b32.xlu0 %v600_v35, %s1037_s2  ;;  %581 = vrot.lane.b32.xlu1 %v573_v36, %s1036_s15  ;;  %s985_s15 = sld [smem:[#allocation2 + $0xd]]  ;;  %v1295_v36 = vld [vmem:[%s1342_s4] sm:$0xf] }
 0x165   :  { %665 = vrot.lane.b32.xlu0 %v654_v38, %s1039_s20  ;;  %637 = vrot.lane.b32.xlu1 %v627_v39, %s1038_s18 }
 0x167   :  { %v733_v19 = vstv %s985_s15 }
 0x168   :  { %v734_v27 = vmul.f32 %v1289_v18, %v733_v19 }
 0x169   :  { %635 = vrot.lane.b32.xlu0 %v626_v40, %s1038_s18  ;;  %607 = vrot.lane.b32.xlu1 %v599_v41, %s1037_s2 }
 0x16a   :  { %v776_v34 = vcombine.high %v734_v27, %v734_v27 }
 0x16d   :  { %691 = vrot.lane.b32.xlu0 %v680_v44, %s1040_s22  ;;  %663 = vrot.lane.b32.xlu1 %v653_v46, %s1039_s20 }
 0x171   :  { %661 = vrot.lane.b32.xlu0 %v652_v47, %s1039_s20  ;;  %633 = vrot.lane.b32.xlu1 %v625_v48, %s1038_s18 }
 0x175   :  { %717 = vrot.lane.b32.xlu0 %v706_v54, %s1041_s23  ;;  %689 = vrot.lane.b32.xlu1 %v679_v55, %s1040_s22 }
 0x179   :  { %687 = vrot.lane.b32.xlu0 %v678_v56, %s1040_s22  ;;  %659 = vrot.lane.b32.xlu1 %v651_v57, %s1039_s20 }
 0x17d   :  { %685 = vrot.lane.b32.xlu0 %v677_v58, %s1040_s22  ;;  %715 = vrot.lane.b32.xlu1 %v705_v59, %s1041_s23  ;;  %s966_s22 = sld [smem:[#allocation2 + $0x1]] }
 0x181   :  { %711 = vrot.lane.b32.xlu0 %v703_v60, %s1041_s23  ;;  %713 = vrot.lane.b32.xlu1 %v704_v61, %s1041_s23 }
 0x1af   :  { %v302_v9 = vpop.permute.xlu0 %301 }
 0x1b0   :  { %v409_v10 = vadd.f32 %v408_v7, %v302_v9  ;;  %v411_v11 = vadd.f32 %v410_v8, %v302_v9 }
 0x1b2   :  { %v420_v13 = vmax.f32 %v411_v11, 0.0  ;;  %v419_v14 = vmax.f32 %v409_v10, 0.0 }
 0x1b4   :  { %454 = vmatprep.subr.mxu1 %v420_v13 }
 0x1b5   :  { %455 = vmatpush1.msra.mxu1 %v419_v14 }
 0x1b8   :  { %v297_v15 = vpop.permute.xlu1 %296 }
 0x1b9   :  { %v403_v16 = vadd.f32 %v402_v4, %v297_v15  ;;  %v405_v17 = vadd.f32 %v404_v6, %v297_v15 }
 0x1bb   :  { %v417_v20 = vmax.f32 %v403_v16, 0.0  ;;  %v418_v21 = vmax.f32 %v405_v17, 0.0 }
 0x1bc   :  { %v292_v22 = vpop.permute.xlu1 %291  ;;  %v287_v23 = vpop.permute.xlu0 %286 }
 0x1bd   :  { %v397_v24 = vadd.f32 %v396_v1, %v292_v22  ;;  %v399_v25 = vadd.f32 %v398_v3, %v292_v22  ;;  %v393_v26 = vadd.f32 %v392_v63, %v287_v23  ;;  %456 = vmatprep.subr.mxu1 %v418_v21  ;;  %v391_v28 = vadd.f32 %v390_v62, %v287_v23 }
 0x1be   :  { %457 = vmatpush1.msra.mxu1 %v417_v20 }
 0x1bf   :  { %v415_v29 = vmax.f32 %v397_v24, 0.0  ;;  %v416_v30 = vmax.f32 %v399_v25, 0.0  ;;  %v414_v33 = vmax.f32 %v393_v26, 0.0  ;;  %v413_v35 = vmax.f32 %v391_v28, 0.0 }
 0x1c0   :  { %v536_v31 = vpop.permute.xlu1 %535  ;;  %v534_v32 = vpop.permute.xlu0 %533 }
 0x1c1   :  { %458 = vmatprep.subr.mxu1 %v416_v30  ;;  %v544_v57 = vadd.f32 %v536_v31, %v1087_v0  ;;  %v543_v63 = vadd.f32 %v534_v32, %v1098_v5 }
 0x1c2   :  { %459 = vmatpush1.msra.mxu1 %v415_v29 }
 0x1c3   :  { %460 = vmatprep.subr.mxu1 %v414_v33 }
 0x1c4   :  { %v562_v37 = vpop.permute.xlu1 %561  ;;  %v532_v38 = vpop.permute.xlu0 %531  ;;  %461 = vmatpush1.msra.mxu1 %v413_v35 }
 0x1c5   :  { %982 = vmatmul.mubr.msk.f32.vlgmr.msra.gmra.mxu1 %vm426_vm2, %v1295_v36  ;;  %995 = vmatprep.subr.msk.mxu1 %vm319_vm0, %v776_v34  ;;  %v570_v60 = vadd.f32 %v562_v37, %v544_v57  ;;  %v542_v7 = vadd.f32 %v532_v38, %v1092_v2 }
 0x1c6   :  { %996 = vmatpush1.msk.msra.mxu1 %vm319_vm0, %v734_v27  ;;  %845 = vmatprep.mubr.f32.mxu1 %v1042_v42 }
 0x1c8   :  { %v560_v39 = vpop.permute.xlu1 %559  ;;  %v588_v40 = vpop.permute.xlu0 %587 }
 0x1c9   :  { %997 = vmatmul.mubr.msk.f32.vlgmr.msra.gmra.mxu1 %vm306_vm1, %v1179_v49  ;;  %v596_v61 = vadd.f32 %v588_v40, %v570_v60  ;;  %v569_v4 = vadd.f32 %v560_v39, %v543_v63 }
 0x1ca   :  { %851 = vmatprep.mubr.f32.mxu1 %v1042_v42 }
 0x1cc   :  { %v530_v41 = vpop.permute.xlu1 %529  ;;  %v558_v43 = vpop.permute.xlu0 %557 }
 0x1cd   :  { %998 = vmatmul.mubr.msk.f32.gmra.mxu1 %vm306_vm1, %v1189_v50  ;;  %v541_v8 = vadd.f32 %v530_v41, %v1112_v12  ;;  %v568_v14 = vadd.f32 %v558_v43, %v542_v7 }
 0x1ce   :  { %857 = vmatprep.mubr.f32.mxu1 %v1042_v42 }
 0x1d0   :  { %v586_v44 = vpop.permute.xlu1 %585  ;;  %v614_v46 = vpop.permute.xlu0 %613 }
 0x1d1   :  { %999 = vmatmul.mubr.msk.f32.gmra.mxu1 %vm306_vm1, %v1197_v51  ;;  %v595_v9 = vadd.f32 %v586_v44, %v569_v4 }
 0x1d2   :  { %863 = vmatprep.mubr.f32.mxu1 %v1042_v42  ;;  %v622_v42 = vadd.f32 %v614_v46, %v596_v61 }
 0x1d4   :  { %v556_v47 = vpop.permute.xlu1 %555  ;;  %v584_v48 = vpop.permute.xlu0 %583 }
 0x1d5   :  { %1000 = vmatmul.mubr.msk.f32.gmra.mxu1 %vm306_vm1, %v1205_v52  ;;  %v567_v15 = vadd.f32 %v556_v47, %v541_v8  ;;  %v594_v19 = vadd.f32 %v584_v48, %v568_v14 }
 0x1d8   :  { %v612_v49 = vpop.permute.xlu1 %611  ;;  %v640_v53 = vpop.permute.xlu0 %639 }
 0x1d9   :  { %v648_v1 = vadd.f32 %v640_v53, %v622_v42  ;;  %v621_v16 = vadd.f32 %v612_v49, %v595_v9 }
 0x1dc   :  { %v582_v54 = vpop.permute.xlu1 %581  ;;  %v610_v55 = vpop.permute.xlu0 %609 }
 0x1dd   :  { %v593_v20 = vadd.f32 %v582_v54, %v567_v15  ;;  %v620_v25 = vadd.f32 %v610_v55, %v594_v19 }
 0x1e0   :  { %v638_v56 = vpop.permute.xlu1 %637  ;;  %v666_v50 = vpop.permute.xlu0 %665 }
 0x1e1   :  { %v674_v6 = vadd.f32 %v666_v50, %v648_v1  ;;  %v647_v21 = vadd.f32 %v638_v56, %v621_v16 }
 0x1e4   :  { %v608_v58 = vpop.permute.xlu1 %607  ;;  %v636_v59 = vpop.permute.xlu0 %635 }
 0x1e5   :  { %v619_v26 = vadd.f32 %v608_v58, %v593_v20  ;;  %v646_v28 = vadd.f32 %v636_v59, %v620_v25  ;;  %v41_v58 = vld [vmem:[%s1343_s5] sm:$0xf]  ;;  %v1045_v59 = vmov 0   ;;  %s46_s5 = sld [smem:[#allocation2]] }
 0x1e8   :  { %v664_v51 = vpop.permute.xlu1 %663  ;;  %v692_v62 = vpop.permute.xlu0 %691 }
 0x1e9   :  { %v700_v10 = vadd.f32 %v692_v62, %v674_v6  ;;  %v673_v27 = vadd.f32 %v664_v51, %v647_v21 }
 0x1ec   :  { %v634_v3 = vpop.permute.xlu1 %633  ;;  %v662_v52 = vpop.permute.xlu0 %661 }
 0x1ed   :  { %v645_v29 = vadd.f32 %v634_v3, %v619_v26  ;;  %v672_v33 = vadd.f32 %v662_v52, %v646_v28 }
 0x1f0   :  { %v690_v11 = vpop.permute.xlu1 %689  ;;  %v718_v13 = vpop.permute.xlu0 %717 }
 0x1f1   :  { %v726_v17 = vadd.f32 %v718_v13, %v700_v10  ;;  %v699_v30 = vadd.f32 %v690_v11, %v673_v27 }
 0x1f3   :  { %v730_v22 = vmax.f32 %v726_v17, 0.0 }
 0x1f4   :  { %v660_v23 = vpop.permute.xlu1 %659  ;;  %v688_v24 = vpop.permute.xlu0 %687 }
 0x1f5   :  { %745 = vrot.lane.b32.xlu1 %v730_v22, %s1044_s3  ;;  %v671_v34 = vadd.f32 %v660_v23, %v645_v29  ;;  %v698_v37 = vadd.f32 %v688_v24, %v672_v33  ;;  %v501_v22 = vstv %s46_s5  ;;  %v503_v24 = vstv %s966_s22 }
 0x1f6   :  { %v502_v29 = vmul.f32 %v501_v22, %v1171_v45 }
 0x1f8   :  { %v716_v31 = vpop.permute.xlu1 %715  ;;  %v686_v32 = vpop.permute.xlu0 %685 }
 0x1f9   :  { %v725_v35 = vadd.f32 %v716_v31, %v699_v30  ;;  %v697_v39 = vadd.f32 %v686_v32, %v671_v34 }
 0x1fb   :  { %v729_v38 = vmax.f32 %v725_v35, 0.0 }
 0x1fc   :  { %v714_v40 = vpop.permute.xlu1 %713  ;;  %v712_v41 = vpop.permute.xlu0 %711 }
 0x1fd   :  { %v724_v43 = vadd.f32 %v714_v40, %v698_v37  ;;  %v723_v44 = vadd.f32 %v712_v41, %v697_v39  ;;  %743 = vrot.lane.b32.xlu0 %v729_v38, %s1044_s3  ;;  %v951_v37 = vstv %s984_s25  ;;  %v949_v39 = vstv %s983_s26 }
 0x1fe   :  { %v950_v41 = vmul.f32 %v1289_v18, %v949_v39 }
 0x1ff   :  { %v728_v46 = vmax.f32 %v724_v43, 0.0  ;;  %v727_v47 = vmax.f32 %v723_v44, 0.0 }
 0x201   :  { %741 = vrot.lane.b32.xlu1 %v728_v46, %s1044_s3  ;;  %739 = vrot.lane.b32.xlu0 %v727_v47, %s1044_s3 }
 0x267   :  { %v746_v48 = vpop.permute.xlu1 %745 }
 0x268   :  { %v754_v49 = vadd.f32 %v746_v48, %v1087_v0 }
 0x26a   :  { %772 = vperm.xlu1 %1017, %v754_v49  }
 0x26f   :  { %v744_v53 = vpop.permute.xlu0 %743 }
 0x270   :  { %v753_v54 = vadd.f32 %v744_v53, %v1098_v5 }
 0x272   :  { %767 = vperm.xlu0 %1016, %v753_v54  }
 0x273   :  { %v742_v55 = vpop.permute.xlu1 %741  ;;  %v740_v56 = vpop.permute.xlu0 %739 }
 0x274   :  { %v752_v50 = vadd.f32 %v742_v55, %v1092_v2  ;;  %v751_v57 = vadd.f32 %v740_v56, %v1112_v12 }
 0x276   :  { %762 = vperm.xlu1 %1017, %v752_v50   ;;  %757 = vperm.xlu0 %1016, %v751_v57  }
 0x27a   :  { %1018 = vset.pattern.permute.xlu1 %v1045_v59 }
 0x27b   :  { %423 = vperm.xlu1 %1018, %v41_v58  }
 0x285   :  { %v496_v0 = vpop.f32.mrf.mxu1 }
 0x287   :  { %v498_v60 = vpop.f32.mrf.mxu1 }
 0x289   :  { %v847_v61 = vpop.f32.mrf.mxu1 }
 0x28b   :  { %v849_v5 = vpop.f32.mrf.mxu1 }
 0x28d   :  { %v853_v51 = vpop.f32.mrf.mxu1 }
 0x28f   :  { %v855_v62 = vpop.f32.mrf.mxu1 }
 0x291   :  { %v859_v42 = vpop.f32.mrf.mxu1 }
 0x293   :  { %v861_v63 = vpop.f32.mrf.mxu1 }
 0x295   :  { %v865_v2 = vpop.f32.mrf.mxu1 }
 0x297   :  { %v867_v1 = vpop.f32.mrf.mxu1 }
 0x2e5   :  { %v773_v12 = vpop.permute.xlu1 %772 }
 0x2e6   :  { %v866_v3 = vadd.f32 %v865_v2, %v773_v12  ;;  %v868_v52 = vadd.f32 %v867_v1, %v773_v12 }
 0x2e8   :  { %v876_v4 = vmax.f32 %v866_v3, 0.0  ;;  %v877_v6 = vmax.f32 %v868_v52, 0.0 }
 0x2ea   :  { %902 = vmatprep.subr.mxu0 %v877_v6 }
 0x2eb   :  { %903 = vmatpush1.msra.mxu0 %v876_v4 }
 0x2ed   :  { %v768_v7 = vpop.permute.xlu0 %767 }
 0x2ee   :  { %v860_v8 = vadd.f32 %v859_v42, %v768_v7  ;;  %v862_v9 = vadd.f32 %v861_v63, %v768_v7 }
 0x2f0   :  { %v874_v10 = vmax.f32 %v860_v8, 0.0  ;;  %v875_v11 = vmax.f32 %v862_v9, 0.0 }
 0x2f1   :  { %v763_v13 = vpop.permute.xlu1 %762  ;;  %v758_v14 = vpop.permute.xlu0 %757 }
 0x2f2   :  { %v854_v15 = vadd.f32 %v853_v51, %v763_v13  ;;  %v856_v16 = vadd.f32 %v855_v62, %v763_v13  ;;  %v850_v17 = vadd.f32 %v849_v5, %v758_v14  ;;  %904 = vmatprep.subr.mxu0 %v875_v11  ;;  %v848_v19 = vadd.f32 %v847_v61, %v758_v14 }
 0x2f3   :  { %905 = vmatpush1.msra.mxu0 %v874_v10 }
 0x2f4   :  { %v872_v20 = vmax.f32 %v854_v15, 0.0  ;;  %v873_v21 = vmax.f32 %v856_v16, 0.0  ;;  %v871_v23 = vmax.f32 %v850_v17, 0.0  ;;  %v870_v26 = vmax.f32 %v848_v19, 0.0 }
 0x2f6   :  { %v424_v25 = vpop.permute.xlu1 %423  ;;  %906 = vmatprep.subr.mxu0 %v873_v21 }
 0x2f7   :  { %v497_v27 = vadd.f32 %v496_v0, %v424_v25  ;;  %v499_v28 = vadd.f32 %v498_v60, %v424_v25  ;;  %907 = vmatpush1.msra.mxu0 %v872_v20 }
 0x2f8   :  { %908 = vmatprep.subr.mxu0 %v871_v23 }
 0x2f9   :  { %v504_v30 = vmul.f32 %v503_v24, %v497_v27  ;;  %v505_v31 = vmul.f32 %v503_v24, %v499_v28  ;;  %909 = vmatpush1.msra.mxu0 %v870_v26 }
 0x2fa   :  { %1001 = vmatmul.mubr.msk.f32.vlgmr.msra.gmra.mxu0 %vm426_vm2, %v1295_v36 }
 0x2fb   :  { %v508_v32 = vcombine.low %v504_v30, %v505_v31 }
 0x2fd   :  { %v510_v33 = vadd.f32 %v508_v32, %v502_v29 }
 0x2ff   :  { %511 = vst [vmem:[%s1344_s6] sm:$0xff] %v510_v33 }
 0x3ba   :  { %v944_v34 = vpop.f32.mrf.mxu0 }
 0x3bb   :  { %v945_v35 = vadd.f32 %v944_v34, %v424_v25 }
 0x3bc   :  { %v946_v38 = vpop.f32.mrf.mxu0 }
 0x3bd   :  { %v947_v45 = vadd.f32 %v946_v38, %v424_v25  ;;  %v952_v40 = vmul.f32 %v951_v37, %v945_v35 }
 0x3bf   :  { %v953_v43 = vmul.f32 %v951_v37, %v947_v45 }
 0x3c1   :  { %v956_v44 = vcombine.low %v952_v40, %v953_v43 }
 0x3c3   :  { %v958_v36 = vadd.f32 %v956_v44, %v950_v41 }
 0x3c5   :  { %1002 = vst [vmem:[%s1344_s6 + $0x8] sm:$0xff] %v958_v36 }
 0x3c6   :  { %965 = vsyncpa [#allocation3], 1 }

</bundles_post_ra>
